<compile_context>
chip_gen: v7x
topology: tpu7x:2x2x1
jax: 0.10.0
libtpu: 0.0.40
codegen_flags: <defaults>
</compile_context>

<pallas_src>
import functools

import jax
import jax.numpy as jnp
from jax.experimental import pallas as pl
from jax.experimental.pallas import tpu as pltpu


def _round_up(x, m):
    return (x + m - 1) // m * m


def _actor_critic_kernel(x_ref, w1_ref, w2_ref, w3_ref, b_ref, out_ref, *,
                         h_pad, half_pad, a_pad):
    """Fused MLP forward: relu(x@W1+b1) -> relu(h1@W2+b2) -> h2@W3+b3.

    x_ref  : (TM, F)            f32  (cast to bf16 in-kernel for the MXU)
    w1_ref : (F, H_PAD)         bf16
    w2_ref : (H_PAD, HALF_PAD)  bf16
    w3_ref : (HALF_PAD, A_PAD)  bf16
    b_ref  : (8, MAXW)          f32  rows 0/1/2 hold b1/b2/b3 (zero padded)
    out_ref: (TM, A_PAD)        f32
    """
    x = x_ref[...].astype(jnp.bfloat16)     # (TM, F) bf16, cast on-chip
    biases = b_ref[...]                     # (8, MAXW) f32

    # fc1: bf16 MXU matmul, f32 accumulate; bias-add + ReLU in f32 (v5e-safe).
    h1 = jnp.dot(x, w1_ref[...], preferred_element_type=jnp.float32)
    h1 = jnp.maximum(h1 + biases[0:1, :h_pad], 0.0)
    # dropout(p=0.25): identity in eval mode.

    # fc2
    h2 = jnp.dot(h1.astype(jnp.bfloat16), w2_ref[...],
                 preferred_element_type=jnp.float32)
    h2 = jnp.maximum(h2 + biases[1:2, :half_pad], 0.0)
    # dropout(p=0.25): identity in eval mode.

    # state_action_head
    out = jnp.dot(h2.astype(jnp.bfloat16), w3_ref[...],
                  preferred_element_type=jnp.float32)
    out_ref[...] = (out + biases[2:3, :a_pad]).astype(out_ref.dtype)


def prepare_params(w1, b1, w2, b2, w3, b3):
    """One-time padding/packing of the parameters (hoisted out of the call path).

    Weights are zero-padded to lane-dense 128-multiples on their output (N)
    dims (and on K dims where they must match the previous layer's padded N),
    cast to bf16 (MXU-native), and the three tiny bias vectors are packed into
    a single (8, MAXW) f32 operand so each forward call issues one bias DMA.
    """
    F, H = w1.shape
    HALF = w2.shape[1]
    A = w3.shape[1]

    H_PAD = _round_up(H, 128)
    HALF_PAD = _round_up(HALF, 128)
    A_PAD = _round_up(A, 128)
    MAXW = max(H_PAD, HALF_PAD, A_PAD)

    w1p = jnp.zeros((F, H_PAD), jnp.bfloat16).at[:, :H].set(
        w1.astype(jnp.bfloat16))
    w2p = jnp.zeros((H_PAD, HALF_PAD), jnp.bfloat16).at[:H, :HALF].set(
        w2.astype(jnp.bfloat16))
    w3p = jnp.zeros((HALF_PAD, A_PAD), jnp.bfloat16).at[:HALF, :A].set(
        w3.astype(jnp.bfloat16))

    bpack = jnp.zeros((8, MAXW), jnp.float32)
    bpack = bpack.at[0, :H].set(b1.astype(jnp.float32))
    bpack = bpack.at[1, :HALF].set(b2.astype(jnp.float32))
    bpack = bpack.at[2, :A].set(b3.astype(jnp.float32))

    dims = dict(F=F, H=H, HALF=HALF, A=A,
                H_PAD=H_PAD, HALF_PAD=HALF_PAD, A_PAD=A_PAD, MAXW=MAXW)
    return (w1p, w2p, w3p, bpack, dims)


def actor_critic_forward(x, params, *, tile_m=256, unpad=True):
    """Batched fused forward pass.

    x      : (B, num_features) float32
    params : output of prepare_params()
    returns (B, num_actions) float32   (or the padded (B_PAD, A_PAD) slab if
                                        unpad=False, avoiding the slice copy)
    """
    w1p, w2p, w3p, bpack, d = params
    B, F = x.shape
    assert F == d["F"], "feature dim mismatch with prepared params"

    H_PAD, HALF_PAD, A_PAD, MAXW = d["H_PAD"], d["HALF_PAD"], d["A_PAD"], d["MAXW"]

    # Pick the row tile: one big step when the batch fits (amortizes grid
    # overhead, fills the 256-wide MXU on v6e/v7x); otherwise tile_m rows per
    # step with a "parallel" grid so v7x can shard the batch across TCs.
    if B <= tile_m:
        tile_m = max(8, _round_up(B, 8))
    B_PAD = _round_up(B, tile_m)
    if B_PAD != B:
        x = jnp.pad(x, ((0, B_PAD - B), (0, 0)))   # rows only; K stays unpadded

    grid = (B_PAD // tile_m,)

    kernel = functools.partial(_actor_critic_kernel,
                               h_pad=H_PAD, half_pad=HALF_PAD, a_pad=A_PAD)

    flops = 2 * B_PAD * (F * H_PAD + H_PAD * HALF_PAD + HALF_PAD * A_PAD)
    bytes_accessed = (
        4 * B_PAD * F                                    # f32 x
        + 2 * (w1p.size + w2p.size + w3p.size)           # bf16 weights (resident)
        + 4 * bpack.size                                 # f32 bias pack
        + 4 * B_PAD * A_PAD)                             # f32 output

    out = pl.pallas_call(
        kernel,
        out_shape=jax.ShapeDtypeStruct((B_PAD, A_PAD), jnp.float32),
        grid=grid,
        in_specs=[
            pl.BlockSpec((tile_m, F), lambda i: (i, 0)),        # x tile (full-extent K)
            pl.BlockSpec((F, H_PAD), lambda i: (0, 0)),         # W1 resident
            pl.BlockSpec((H_PAD, HALF_PAD), lambda i: (0, 0)),  # W2 resident
            pl.BlockSpec((HALF_PAD, A_PAD), lambda i: (0, 0)),  # W3 resident
            pl.BlockSpec((8, MAXW), lambda i: (0, 0)),          # bias pack
        ],
        out_specs=pl.BlockSpec((tile_m, A_PAD), lambda i: (i, 0)),
        compiler_params=pltpu.CompilerParams(
            dimension_semantics=("parallel",),
        ),
        cost_estimate=pl.CostEstimate(
            flops=flops, transcendentals=0, bytes_accessed=bytes_accessed),
    )(x, w1p, w2p, w3p, bpack)

    if unpad:
        return out[:B, :d["A"]]
    return out


def init_params(key, num_features, num_actions, hidden_size):
    """PyTorch-Linear-style init: U(-1/sqrt(fan_in), 1/sqrt(fan_in)).

    Weights are created in (in, out) layout (transposed vs. torch) so the
    kernel's y = x @ W + b matches torch's x @ W_pt.T + b.
    """
    half = hidden_size // 2
    ks = jax.random.split(key, 6)

    def u(k, shape, fan_in):
        bound = 1.0 / jnp.sqrt(jnp.float32(fan_in))
        return jax.random.uniform(k, shape, jnp.float32, -bound, bound)

    w1 = u(ks[0], (num_features, hidden_size), num_features)
    b1 = u(ks[1], (hidden_size,), num_features)
    w2 = u(ks[2], (hidden_size, half), hidden_size)
    b2 = u(ks[3], (half,), hidden_size)
    w3 = u(ks[4], (half, num_actions), half)
    b3 = u(ks[5], (num_actions,), half)
    return w1, b1, w2, b2, w3, b3


def _ref_forward(x, w1, b1, w2, b2, w3, b3):
    """Pure-JAX eval-mode reference mirroring the kernel's bf16 MXU inputs.

    Note: bf16 MXU inputs mean ~1e-2 relative difference vs. a pure-f32 torch
    module at larger hidden sizes; tolerance below is against this bf16 ref.
    """
    bf = lambda a: a.astype(jnp.bfloat16).astype(jnp.float32)
    hp = jax.lax.Precision.HIGHEST
    h1 = jnp.maximum(jnp.dot(bf(x), bf(w1), precision=hp) + b1, 0.0)
    h2 = jnp.maximum(jnp.dot(bf(h1), bf(w2), precision=hp) + b2, 0.0)
    return jnp.dot(bf(h2), bf(w3), precision=hp) + b3


if __name__ == "__main__":
    # Small, module-consistent shapes (batched RL rows amortize launch cost).
    batch = 256
    num_features = 32    # factors.shape[1] + 1 (synthetic)
    num_actions = 8      # fixed_shrk_data.shape[1] - 2 (synthetic)
    hidden_size = 32

    key = jax.random.PRNGKey(0)
    k_x, k_p = jax.random.split(key)

    x = jax.random.normal(k_x, (batch, num_features), dtype=jnp.float32)
    w1, b1, w2, b2, w3, b3 = init_params(k_p, num_features, num_actions,
                                         hidden_size)

    # One-time parameter preparation (padding + bf16 cast hoisted out of the
    # per-call path).
    params = prepare_params(w1, b1, w2, b2, w3, b3)
    params = jax.block_until_ready(params)

    out = actor_critic_forward(x, params)
    out = jax.block_until_ready(out)

    ref = _ref_forward(x, w1, b1, w2, b2, w3, b3)
    assert out.shape == (batch, num_actions)
    assert jnp.allclose(out, ref, atol=1e-4, rtol=1e-4), (
        float(jnp.max(jnp.abs(out - ref))))

    print("KERNEL_OK")
</pallas_src>

<mosaic_0001>
module attributes {stable_mosaic.version = 11 : i64} {
  func.func @_actor_critic_kernel(%arg0: i32, %arg1: memref<256x32xf32, #tpu.memory_space<vmem>>, %arg2: memref<32x128xbf16, #tpu.memory_space<vmem>>, %arg3: memref<128x128xbf16, #tpu.memory_space<vmem>>, %arg4: memref<128x128xbf16, #tpu.memory_space<vmem>>, %arg5: memref<8x128xf32, #tpu.memory_space<vmem>>, %arg6: memref<256x128xf32, #tpu.memory_space<vmem>>) attributes {dimension_semantics = [#tpu.dimension_semantics<parallel>], iteration_bounds = array<i64: 1>, scalar_prefetch = 0 : i64, scratch_operands = 0 : i64, tpu.core_type = #tpu.core_type<tc>, window_params = [{transform_indices = @transform_0, window_bounds = array<i64: 256, 32>}, {pipeline_mode = #tpu.pipeline_mode<synchronous>, transform_indices = @transform_1, window_bounds = array<i64: 32, 128>}, {pipeline_mode = #tpu.pipeline_mode<synchronous>, transform_indices = @transform_2, window_bounds = array<i64: 128, 128>}, {pipeline_mode = #tpu.pipeline_mode<synchronous>, transform_indices = @transform_3, window_bounds = array<i64: 128, 128>}, {pipeline_mode = #tpu.pipeline_mode<synchronous>, transform_indices = @transform_4, window_bounds = array<i64: 8, 128>}, {transform_indices = @transform_5, window_bounds = array<i64: 256, 128>}]} {
    %c0 = arith.constant 0 : index
    %c0_0 = arith.constant 0 : index
    %0 = vector.load %arg1[%c0, %c0_0] : memref<256x32xf32, #tpu.memory_space<vmem>>, vector<256x32xf32>
    %1 = arith.truncf %0 : vector<256x32xf32> to vector<256x32xbf16>
    %c0_1 = arith.constant 0 : index
    %c0_2 = arith.constant 0 : index
    %2 = vector.load %arg5[%c0_1, %c0_2] : memref<8x128xf32, #tpu.memory_space<vmem>>, vector<8x128xf32>
    %c0_3 = arith.constant 0 : index
    %c0_4 = arith.constant 0 : index
    %3 = vector.load %arg2[%c0_3, %c0_4] : memref<32x128xbf16, #tpu.memory_space<vmem>>, vector<32x128xbf16>
    %cst = arith.constant dense<0.000000e+00> : vector<256x128xf32>
    %4 = tpu.matmul %1, %3, %cst {dimension_numbers = #tpu.dot_dimension_numbers<[1], [0], [0], [1], [0, 0, 1, 1], [], []>} : vector<256x32xbf16>, vector<32x128xbf16>, vector<256x128xf32> -> vector<256x128xf32>
    %5 = vector.extract_strided_slice %2 {offsets = [0, 0], sizes = [1, 128], strides = [1, 1]} : vector<8x128xf32> to vector<1x128xf32>
    %6 = vector.broadcast %5 : vector<1x128xf32> to vector<256x128xf32>
    %7 = arith.addf %4, %6 : vector<256x128xf32>
    %cst_5 = arith.constant 0.000000e+00 : f32
    %8 = vector.broadcast %cst_5 : f32 to vector<256x128xf32>
    %9 = arith.maximumf %7, %8 : vector<256x128xf32>
    %10 = arith.truncf %9 : vector<256x128xf32> to vector<256x128xbf16>
    %c0_6 = arith.constant 0 : index
    %c0_7 = arith.constant 0 : index
    %11 = vector.load %arg3[%c0_6, %c0_7] : memref<128x128xbf16, #tpu.memory_space<vmem>>, vector<128x128xbf16>
    %cst_8 = arith.constant dense<0.000000e+00> : vector<256x128xf32>
    %12 = tpu.matmul %10, %11, %cst_8 {dimension_numbers = #tpu.dot_dimension_numbers<[1], [0], [0], [1], [0, 0, 1, 1], [], []>} : vector<256x128xbf16>, vector<128x128xbf16>, vector<256x128xf32> -> vector<256x128xf32>
    %13 = vector.extract_strided_slice %2 {offsets = [1, 0], sizes = [1, 128], strides = [1, 1]} : vector<8x128xf32> to vector<1x128xf32>
    %14 = vector.broadcast %13 : vector<1x128xf32> to vector<256x128xf32>
    %15 = arith.addf %12, %14 : vector<256x128xf32>
    %cst_9 = arith.constant 0.000000e+00 : f32
    %16 = vector.broadcast %cst_9 : f32 to vector<256x128xf32>
    %17 = arith.maximumf %15, %16 : vector<256x128xf32>
    %18 = arith.truncf %17 : vector<256x128xf32> to vector<256x128xbf16>
    %c0_10 = arith.constant 0 : index
    %c0_11 = arith.constant 0 : index
    %19 = vector.load %arg4[%c0_10, %c0_11] : memref<128x128xbf16, #tpu.memory_space<vmem>>, vector<128x128xbf16>
    %cst_12 = arith.constant dense<0.000000e+00> : vector<256x128xf32>
    %20 = tpu.matmul %18, %19, %cst_12 {dimension_numbers = #tpu.dot_dimension_numbers<[1], [0], [0], [1], [0, 0, 1, 1], [], []>} : vector<256x128xbf16>, vector<128x128xbf16>, vector<256x128xf32> -> vector<256x128xf32>
    %21 = vector.extract_strided_slice %2 {offsets = [2, 0], sizes = [1, 128], strides = [1, 1]} : vector<8x128xf32> to vector<1x128xf32>
    %22 = vector.broadcast %21 : vector<1x128xf32> to vector<256x128xf32>
    %23 = arith.addf %20, %22 : vector<256x128xf32>
    %c0_13 = arith.constant 0 : index
    %c0_14 = arith.constant 0 : index
    %24 = vector.load %arg6[%c0_13, %c0_14] : memref<256x128xf32, #tpu.memory_space<vmem>>, vector<256x128xf32>
    tpu.vector_store %arg6[%c0_13, %c0_14], %23 {strides = array<i32>} : memref<256x128xf32, #tpu.memory_space<vmem>>, vector<256x128xf32>,
    return
  }
  func.func @transform_0(%arg0: i32) -> (i32, i32) {
    %c0_i32 = arith.constant 0 : i32
    %c0_i32_0 = arith.constant 0 : i32
    return %arg0, %c0_i32 : i32, i32
  }
  func.func @transform_1(%arg0: i32) -> (i32, i32) {
    %c0_i32 = arith.constant 0 : i32
    %c0_i32_0 = arith.constant 0 : i32
    %c0_i32_1 = arith.constant 0 : i32
    return %c0_i32, %c0_i32_0 : i32, i32
  }
  func.func @transform_2(%arg0: i32) -> (i32, i32) {
    %c0_i32 = arith.constant 0 : i32
    %c0_i32_0 = arith.constant 0 : i32
    %c0_i32_1 = arith.constant 0 : i32
    return %c0_i32, %c0_i32_0 : i32, i32
  }
  func.func @transform_3(%arg0: i32) -> (i32, i32) {
    %c0_i32 = arith.constant 0 : i32
    %c0_i32_0 = arith.constant 0 : i32
    %c0_i32_1 = arith.constant 0 : i32
    return %c0_i32, %c0_i32_0 : i32, i32
  }
  func.func @transform_4(%arg0: i32) -> (i32, i32) {
    %c0_i32 = arith.constant 0 : i32
    %c0_i32_0 = arith.constant 0 : i32
    %c0_i32_1 = arith.constant 0 : i32
    return %c0_i32, %c0_i32_0 : i32, i32
  }
  func.func @transform_5(%arg0: i32) -> (i32, i32) {
    %c0_i32 = arith.constant 0 : i32
    %c0_i32_0 = arith.constant 0 : i32
    return %arg0, %c0_i32 : i32, i32
  }
}

</mosaic_0001>

<bundles_post_ra>
// kernel: tpu_custom_call.1
= control target key start
LH: loop header
LB: loop body
LE: loop exit
PB: predicated region body
PF: predicated region fallthrough
CT: control target
= control target key end

     0   :  { %vm91_vm0 = vcmask 261120   ;;  %s1519_s0 = inlined_call_operand.vmem [shape: f32[256,32], index: 0, kind: input, shape index: {}]   ;;  %s1520_s1 = inlined_call_operand.vmem [shape: bf16[32,128], index: 1, kind: input, shape index: {}]   ;;  %s1521_s2 = inlined_call_operand.vmem [shape: bf16[128,128], index: 2, kind: input, shape index: {}]   ;;  %s1522_s3 = inlined_call_operand.vmem [shape: bf16[128,128], index: 3, kind: input, shape index: {}]   ;;  %s1523_s4 = inlined_call_operand.vmem [shape: f32[8,128], index: 4, kind: input, shape index: {}]   ;;  %s1524_s5 = inlined_call_operand.hbm [shape: f32[256,128], index: 5, kind: output, shape index: {}]  }
   0x1   :  { %v1142_v0 = vld [vmem:[%s1520_s1] sm:$0xff]   ;;  %v1143_v1 = vld [vmem:[%s1520_s1 + $0x8] sm:$0xff]   ;;  %v24_v5 = vld [vmem:[%s1519_s0 + $0x10] sm:$0xff] }
   0x2   :  { %1003 = vmatprep.subr.bf16.mxu0 %v1142_v0  ;;  %v22_v2 = vld [vmem:[%s1519_s0] sm:$0xff]  ;;  %v23_v3 = vld [vmem:[%s1519_s0 + $0x8] sm:$0xff]  ;;  %1135 = vmatprep.subr.bf16.mxu1 %v1142_v0  ;;  %v25_v6 = vld [vmem:[%s1519_s0 + $0x18] sm:$0xff] }
   0x3   :  { %1004 = vmatpush3.bf16.msra.mxu0 %v1142_v0  ;;  %v54_v4 = vpack.c.bf16 %v23_v3, %v22_v2  ;;  %1137 = vmatpush3.bf16.msra.mxu1 %v1142_v0  ;;  %v26_v7 = vld [vmem:[%s1519_s0 + $0x20] sm:$0xff]  ;;  %v27_v8 = vld [vmem:[%s1519_s0 + $0x28] sm:$0xff]  ;;  %v55_v9 = vpack.c.bf16 %v25_v6, %v24_v5  ;;  %v40_v14 = vld [vmem:[%s1519_s0 + $0x90] sm:$0xff] }
   0x4   :  { %1005 = vmatprep.subr.bf16.mxu0 %v1143_v1  ;;  %1136 = vmatprep.subr.bf16.mxu1 %v1143_v1  ;;  %v56_v10 = vpack.c.bf16 %v27_v8, %v26_v7  ;;  %v38_v11 = vld [vmem:[%s1519_s0 + $0x80] sm:$0xff]  ;;  %v39_v12 = vld [vmem:[%s1519_s0 + $0x88] sm:$0xff]  ;;  %v41_v15 = vld [vmem:[%s1519_s0 + $0x98] sm:$0xff] }
   0x5   :  { %1007 = vmatprep.mubr.msk.bf16.mxu0 %vm91_vm0, %v54_v4  ;;  %v62_v13 = vpack.c.bf16 %v39_v12, %v38_v11  ;;  %v42_v16 = vld [vmem:[%s1519_s0 + $0xa0] sm:$0xff]  ;;  %v63_v17 = vpack.c.bf16 %v41_v15, %v40_v14  ;;  %v43_v18 = vld [vmem:[%s1519_s0 + $0xa8] sm:$0xff]  ;;  %v28_v19 = vld [vmem:[%s1519_s0 + $0x30] sm:$0xff] }
   0x6   :  { %v29_v20 = vld [vmem:[%s1519_s0 + $0x38] sm:$0xff]  ;;  %v30_v21 = vld [vmem:[%s1519_s0 + $0x40] sm:$0xff]  ;;  %v64_v22 = vpack.c.bf16 %v43_v18, %v42_v16  ;;  %v31_v23 = vld [vmem:[%s1519_s0 + $0x48] sm:$0xff] }
   0x7   :  { %1006 = vmatpush3.bf16.msra.mxu0 %v1143_v1  ;;  %1138 = vmatpush3.bf16.msra.mxu1 %v1143_v1  ;;  %v44_v24 = vld [vmem:[%s1519_s0 + $0xb0] sm:$0xff]  ;;  %v45_v25 = vld [vmem:[%s1519_s0 + $0xb8] sm:$0xff]  ;;  %v46_v26 = vld [vmem:[%s1519_s0 + $0xc0] sm:$0xff]  ;;  %v57_v29 = vpack.c.bf16 %v29_v20, %v28_v19  ;;  %v58_v31 = vpack.c.bf16 %v31_v23, %v30_v21 }
   0x8   :  { %1023 = vmatprep.mubr.msk.bf16.mxu1 %vm91_vm0, %v62_v13  ;;  %v47_v27 = vld [vmem:[%s1519_s0 + $0xc8] sm:$0xff]  ;;  %v1144_v28 = vld [vmem:[%s1521_s2] sm:$0xff]   ;;  %v65_v32 = vpack.c.bf16 %v45_v25, %v44_v24  ;;  %v32_v34 = vld [vmem:[%s1519_s0 + $0x50] sm:$0xff] }
   0x9   :  { %v1145_v30 = vld [vmem:[%s1521_s2 + $0x8] sm:$0xff]   ;;  %1039 = vmatprep.subr.bf16.mxu1 %v1144_v28  ;;  %v66_v33 = vpack.c.bf16 %v47_v27, %v46_v26  ;;  %v33_v35 = vld [vmem:[%s1519_s0 + $0x58] sm:$0xff]  ;;  %v1146_v36 = vld [vmem:[%s1521_s2 + $0x10] sm:$0xff]  }
   0xa   :  { %1008 = vmatmul.mubr.msk.bf16.vlgmr.msra.gmra.mrb[0].mxu0 %vm91_vm0, %v55_v9  ;;  %1024 = vmatmul.mubr.msk.bf16.vlgmr.msra.gmra.mrb[0].mxu1 %vm91_vm0, %v63_v17  ;;  %v34_v37 = vld [vmem:[%s1519_s0 + $0x60] sm:$0xff]  ;;  %v35_v38 = vld [vmem:[%s1519_s0 + $0x68] sm:$0xff]  ;;  %v48_v39 = vld [vmem:[%s1519_s0 + $0xd0] sm:$0xff]  ;;  %v59_v44 = vpack.c.bf16 %v33_v35, %v32_v34 }
   0xb   :  { %1011 = vmatprep.mubr.msk.bf16.mxu0 %vm91_vm0, %v56_v10  ;;  %1027 = vmatprep.mubr.msk.bf16.mxu1 %vm91_vm0, %v64_v22  ;;  %v49_v40 = vld [vmem:[%s1519_s0 + $0xd8] sm:$0xff]  ;;  %v50_v41 = vld [vmem:[%s1519_s0 + $0xe0] sm:$0xff]  ;;  %v51_v42 = vld [vmem:[%s1519_s0 + $0xe8] sm:$0xff]  ;;  %v60_v45 = vpack.c.bf16 %v35_v38, %v34_v37 }
   0xc   :  { %1040 = vmatpush3.bf16.msra.mxu1 %v1144_v28  ;;  %v1147_v43 = vld [vmem:[%s1521_s2 + $0x18] sm:$0xff]   ;;  %v67_v46 = vpack.c.bf16 %v49_v40, %v48_v39  ;;  %v1148_v47 = vld [vmem:[%s1521_s2 + $0x20] sm:$0xff]   ;;  %v68_v48 = vpack.c.bf16 %v51_v42, %v50_v41 }
   0xd   :  { %1041 = vmatprep.subr.bf16.mxu1 %v1145_v30 }
  0x10   :  { %1042 = vmatpush3.bf16.msra.mxu1 %v1145_v30 }
  0x11   :  { %1043 = vmatprep.subr.bf16.mxu1 %v1146_v36 }
  0x12   :  { %1012 = vmatmul.mubr.msk.bf16.gmra.mrb[4].mxu0 %vm91_vm0, %v57_v29  ;;  %1028 = vmatmul.mubr.msk.bf16.gmra.mrb[4].mxu1 %vm91_vm0, %v65_v32 }
  0x13   :  { %1015 = vmatprep.mubr.msk.bf16.mxu0 %vm91_vm0, %v58_v31  ;;  %1031 = vmatprep.mubr.msk.bf16.mxu1 %vm91_vm0, %v66_v33 }
  0x14   :  { %1044 = vmatpush3.bf16.msra.mxu1 %v1146_v36 }
  0x15   :  { %1045 = vmatprep.subr.bf16.mxu1 %v1147_v43 }
  0x16   :  { %10 = vsyncpa [#allocation3], 0  ;;  %v36_v49 = vld [vmem:[%s1519_s0 + $0x70] sm:$0xff]  ;;  %v37_v50 = vld [vmem:[%s1519_s0 + $0x78] sm:$0xff]  ;;  %v75_v0 = vlaneseq }
  0x17   :  { %v52_v51 = vld [vmem:[%s1519_s0 + $0xf0] sm:$0xff]  ;;  %v53_v52 = vld [vmem:[%s1519_s0 + $0xf8] sm:$0xff]  ;;  %v1149_v53 = vld [vmem:[%s1521_s2 + $0x28] sm:$0xff]   ;;  %v61_v54 = vpack.c.bf16 %v37_v50, %v36_v49 }
  0x18   :  { %1046 = vmatpush3.bf16.msra.mxu1 %v1147_v43  ;;  %v69_v55 = vpack.c.bf16 %v53_v52, %v52_v51  ;;  %v1150_v56 = vld [vmem:[%s1521_s2 + $0x30] sm:$0xff]   ;;  %v1151_v57 = vld [vmem:[%s1521_s2 + $0x38] sm:$0xff]   ;;  %v1152_v58 = vld [vmem:[%s1522_s3] sm:$0xff]   ;;  %v1377_v1 = vshrl.u32 %v75_v0, 7 }
  0x19   :  { %1047 = vmatprep.subr.bf16.mxu1 %v1148_v47  ;;  %v1153_v59 = vld [vmem:[%s1522_s3 + $0x8] sm:$0xff]   ;;  %1087 = vmatprep.subr.bf16.mxu0 %v1152_v58  ;;  %v1154_v60 = vld [vmem:[%s1522_s3 + $0x10] sm:$0xff]   ;;  %v1155_v61 = vld [vmem:[%s1522_s3 + $0x18] sm:$0xff]  }
  0x1a   :  { %1016 = vmatmul.mubr.msk.bf16.gmra.mrb[8].mxu0 %vm91_vm0, %v59_v44  ;;  %1032 = vmatmul.mubr.msk.bf16.gmra.mrb[8].mxu1 %vm91_vm0, %v67_v46  ;;  %v1156_v62 = vld [vmem:[%s1522_s3 + $0x20] sm:$0xff]   ;;  %v1157_v63 = vld [vmem:[%s1522_s3 + $0x28] sm:$0xff]   ;;  %v77_v2 = vsub.s32 0, %v1377_v1 }
  0x1b   :  { %1019 = vmatprep.mubr.msk.bf16.mxu0 %vm91_vm0, %v60_v45  ;;  %1035 = vmatprep.mubr.msk.bf16.mxu1 %vm91_vm0, %v68_v48  ;;  %v1383_v3 = vld [vmem:[%s1523_s4] sm:$0xff] }
  0x1c   :  { %1048 = vmatpush3.bf16.msra.mxu1 %v1148_v47  ;;  %1088 = vmatpush3.bf16.msra.mxu0 %v1152_v58  ;;  %v1386_v4 = vrot.slane %v1383_v3, %v77_v2 }
  0x1d   :  { %1049 = vmatprep.subr.bf16.mxu1 %v1149_v53  ;;  %1089 = vmatprep.subr.bf16.mxu0 %v1153_v59 }
  0x20   :  { %1050 = vmatpush3.bf16.msra.mxu1 %v1149_v53  ;;  %1090 = vmatpush3.bf16.msra.mxu0 %v1153_v59 }
  0x21   :  { %1051 = vmatprep.subr.bf16.mxu1 %v1150_v56  ;;  %1091 = vmatprep.subr.bf16.mxu0 %v1154_v60 }
  0x22   :  { %1020 = vmatmul.mubr.msk.bf16.gmra.mrb[12].mxu0 %vm91_vm0, %v61_v54  ;;  %1036 = vmatmul.mubr.msk.bf16.gmra.mrb[12].mxu1 %vm91_vm0, %v69_v55 }
  0x24   :  { %1052 = vmatpush3.bf16.msra.mxu1 %v1150_v56  ;;  %1092 = vmatpush3.bf16.msra.mxu0 %v1154_v60 }
  0x25   :  { %1053 = vmatprep.subr.bf16.mxu1 %v1151_v57  ;;  %1093 = vmatprep.subr.bf16.mxu0 %v1155_v61 }
  0x28   :  { %1054 = vmatpush3.bf16.msra.mxu1 %v1151_v57  ;;  %1094 = vmatpush3.bf16.msra.mxu0 %v1155_v61 }
  0x29   :  { %1095 = vmatprep.subr.bf16.mxu0 %v1156_v62 }
  0x2c   :  { %1096 = vmatpush3.bf16.msra.mxu0 %v1156_v62 }
  0x2d   :  { %1097 = vmatprep.subr.bf16.mxu0 %v1157_v63 }
  0x30   :  { %1098 = vmatpush3.bf16.msra.mxu0 %v1157_v63 }
  0xdd   :  { %v1009_v5 = vpop.f32.mrb[0].mxu0  ;;  %v1025_v8 = vpop.f32.mrb[0].mxu1 }
  0xde   :  { %v183_v6 = vadd.f32 %v1009_v5, %v1386_v4  ;;  %v174_v7 = vpop.f32.mrb[1].mxu0  ;;  %v247_v11 = vadd.f32 %v1025_v8, %v1386_v4  ;;  %v238_v12 = vpop.f32.mrb[1].mxu1 }
  0xdf   :  { %v175_v9 = vadd.f32 %v174_v7, %v1386_v4  ;;  %v1010_v10 = vpop.f32.mrb[2].mxu0  ;;  %v239_v15 = vadd.f32 %v238_v12, %v1386_v4  ;;  %v1026_v16 = vpop.f32.mrb[2].mxu1 }
  0xe0   :  { %v186_v13 = vadd.f32 %v1010_v10, %v1386_v4  ;;  %v177_v14 = vpop.f32.mrb[3].mxu0  ;;  %v319_v18 = vmax.f32 %v247_v11, 0.0  ;;  %v250_v19 = vadd.f32 %v1026_v16, %v1386_v4  ;;  %v241_v20 = vpop.f32.mrb[3].mxu1  ;;  %v303_v21 = vmax.f32 %v183_v6, 0.0 }
  0xe1   :  { %v178_v17 = vadd.f32 %v177_v14, %v1386_v4  ;;  %v317_v23 = vmax.f32 %v239_v15, 0.0  ;;  %v242_v24 = vadd.f32 %v241_v20, %v1386_v4  ;;  %v301_v25 = vmax.f32 %v175_v9, 0.0 }
  0xe2   :  { %v304_v22 = vmax.f32 %v186_v13, 0.0  ;;  %v320_v27 = vmax.f32 %v250_v19, 0.0 }
  0xe3   :  { %v302_v26 = vmax.f32 %v178_v17, 0.0  ;;  %v318_v29 = vmax.f32 %v242_v24, 0.0 }
  0xe4   :  { %v334_v28 = vpack.c.bf16 %v304_v22, %v303_v21  ;;  %v1396_v32 = vpack.c.bf16 %v320_v27, %v319_v18 }
  0xe5   :  { %v333_v30 = vpack.c.bf16 %v302_v26, %v301_v25  ;;  %v1013_v31 = vpop.f32.mrb[4].mxu0  ;;  %v1399_v35 = vpack.c.bf16 %v318_v29, %v317_v23  ;;  %v1029_v36 = vpop.f32.mrb[4].mxu1 }
  0xe6   :  { %v199_v33 = vadd.f32 %v1013_v31, %v1386_v4  ;;  %v190_v34 = vpop.f32.mrb[5].mxu0  ;;  %v263_v39 = vadd.f32 %v1029_v36, %v1386_v4  ;;  %v254_v40 = vpop.f32.mrb[5].mxu1 }
  0xe7   :  { %v191_v37 = vadd.f32 %v190_v34, %v1386_v4  ;;  %v1014_v38 = vpop.f32.mrb[6].mxu0  ;;  %1055 = vmatprep.mubr.bf16.mxu1 %v333_v30  ;;  %v255_v43 = vadd.f32 %v254_v40, %v1386_v4  ;;  %v1030_v44 = vpop.f32.mrb[6].mxu1 }
  0xe8   :  { %v202_v41 = vadd.f32 %v1014_v38, %v1386_v4  ;;  %v193_v42 = vpop.f32.mrb[7].mxu0  ;;  %1056 = vmatmul.mubr.bf16.vlgmr.msra.gmra.mrb[16].mxu1 %v334_v28  ;;  %v323_v46 = vmax.f32 %v263_v39, 0.0  ;;  %v266_v47 = vadd.f32 %v1030_v44, %v1386_v4  ;;  %v257_v48 = vpop.f32.mrb[7].mxu1  ;;  %v307_v49 = vmax.f32 %v199_v33, 0.0 }
  0xe9   :  { %v194_v45 = vadd.f32 %v193_v42, %v1386_v4  ;;  %v321_v51 = vmax.f32 %v255_v43, 0.0  ;;  %v258_v52 = vadd.f32 %v257_v48, %v1386_v4  ;;  %v305_v53 = vmax.f32 %v191_v37, 0.0 }
  0xea   :  { %v308_v50 = vmax.f32 %v202_v41, 0.0  ;;  %v324_v55 = vmax.f32 %v266_v47, 0.0 }
  0xeb   :  { %v306_v54 = vmax.f32 %v194_v45, 0.0  ;;  %v322_v57 = vmax.f32 %v258_v52, 0.0 }
  0xec   :  { %v336_v56 = vpack.c.bf16 %v308_v50, %v307_v49  ;;  %v1408_v60 = vpack.c.bf16 %v324_v55, %v323_v46 }
  0xed   :  { %v335_v58 = vpack.c.bf16 %v306_v54, %v305_v53  ;;  %v1017_v59 = vpop.f32.mrb[8].mxu0  ;;  %v343_v63 = vpack.c.bf16 %v322_v57, %v321_v51  ;;  %v1033_v0 = vpop.f32.mrb[8].mxu1 }
  0xee   :  { %v215_v61 = vadd.f32 %v1017_v59, %v1386_v4  ;;  %v206_v62 = vpop.f32.mrb[9].mxu0  ;;  %v279_v6 = vadd.f32 %v1033_v0, %v1386_v4  ;;  %v270_v7 = vpop.f32.mrb[9].mxu1 }
  0xef   :  { %v207_v2 = vadd.f32 %v206_v62, %v1386_v4  ;;  %v1018_v5 = vpop.f32.mrb[10].mxu0  ;;  %1059 = vmatprep.mubr.bf16.mxu1 %v335_v58  ;;  %v271_v10 = vadd.f32 %v270_v7, %v1386_v4  ;;  %v1034_v11 = vpop.f32.mrb[10].mxu1  ;;  %v1159_v58 = vld [vmem:[%s1522_s3 + $0x38] sm:$0xff]  }
  0xf0   :  { %v218_v8 = vadd.f32 %v1018_v5, %v1386_v4  ;;  %v209_v9 = vpop.f32.mrb[11].mxu0  ;;  %1060 = vmatmul.mubr.bf16.gmra.mrb[20].mxu1 %v336_v56  ;;  %v327_v13 = vmax.f32 %v279_v6, 0.0  ;;  %v282_v14 = vadd.f32 %v1034_v11, %v1386_v4  ;;  %v273_v15 = vpop.f32.mrb[11].mxu1  ;;  %v311_v16 = vmax.f32 %v215_v61, 0.0 }
  0xf1   :  { %v210_v12 = vadd.f32 %v209_v9, %v1386_v4  ;;  %v325_v18 = vmax.f32 %v271_v10, 0.0  ;;  %v274_v19 = vadd.f32 %v273_v15, %v1386_v4  ;;  %v309_v20 = vmax.f32 %v207_v2, 0.0 }
  0xf2   :  { %v312_v17 = vmax.f32 %v218_v8, 0.0  ;;  %v328_v22 = vmax.f32 %v282_v14, 0.0 }
  0xf3   :  { %v310_v21 = vmax.f32 %v210_v12, 0.0  ;;  %v326_v24 = vmax.f32 %v274_v19, 0.0 }
  0xf4   :  { %v338_v23 = vpack.c.bf16 %v312_v17, %v311_v16  ;;  %v346_v27 = vpack.c.bf16 %v328_v22, %v327_v13 }
  0xf5   :  { %v337_v25 = vpack.c.bf16 %v310_v21, %v309_v20  ;;  %v1021_v26 = vpop.f32.mrb[12].mxu0  ;;  %v345_v30 = vpack.c.bf16 %v326_v24, %v325_v18  ;;  %v1037_v31 = vpop.f32.mrb[12].mxu1 }
  0xf6   :  { %v231_v28 = vadd.f32 %v1021_v26, %v1386_v4  ;;  %v222_v29 = vpop.f32.mrb[13].mxu0  ;;  %v295_v36 = vadd.f32 %v1037_v31, %v1386_v4  ;;  %v286_v37 = vpop.f32.mrb[13].mxu1 }
  0xf7   :  { %v223_v33 = vadd.f32 %v222_v29, %v1386_v4  ;;  %v1022_v34 = vpop.f32.mrb[14].mxu0  ;;  %1063 = vmatprep.mubr.bf16.mxu1 %v337_v25  ;;  %v287_v40 = vadd.f32 %v286_v37, %v1386_v4  ;;  %v1038_v41 = vpop.f32.mrb[14].mxu1 }
  0xf8   :  { %v234_v38 = vadd.f32 %v1022_v34, %v1386_v4  ;;  %v225_v39 = vpop.f32.mrb[15].mxu0  ;;  %1064 = vmatmul.mubr.bf16.gmra.mrb[24].mxu1 %v338_v23  ;;  %v331_v43 = vmax.f32 %v295_v36, 0.0  ;;  %v298_v44 = vadd.f32 %v1038_v41, %v1386_v4  ;;  %v289_v45 = vpop.f32.mrb[15].mxu1  ;;  %v315_v46 = vmax.f32 %v231_v28, 0.0 }
  0xf9   :  { %v226_v42 = vadd.f32 %v225_v39, %v1386_v4  ;;  %v329_v48 = vmax.f32 %v287_v40, 0.0  ;;  %v290_v49 = vadd.f32 %v289_v45, %v1386_v4  ;;  %v313_v50 = vmax.f32 %v223_v33, 0.0  ;;  %v1158_v4 = vld [vmem:[%s1522_s3 + $0x30] sm:$0xff]   ;;  %s1184_s3 = smov [#allocation2]  }
  0xfa   :  { %v316_v47 = vmax.f32 %v234_v38, 0.0  ;;  %v332_v52 = vmax.f32 %v298_v44, 0.0  ;;  %1099 = vmatprep.subr.bf16.mxu0 %v1158_v4  ;;  %s892_s13 = sshll.u32 %s1184_s3, 4  ;;  %s893_s13 = int_to_ptr.vmem [resolvable:$true] %s892_s13 }
  0xfb   :  { %v314_v51 = vmax.f32 %v226_v42, 0.0  ;;  %v330_v54 = vmax.f32 %v290_v49, 0.0  ;;  %1100 = vmatpush3.bf16.msra.mxu0 %v1158_v4  ;;  %s1160_s14 = scalar_lea.vmem %s893_s13, 4096  ;;  %p1165_p1 = scmp.lt.s32.totalorder %s893_s13, %s893_s13 }
  0xfc   :  { %v340_v53 = vpack.c.bf16 %v316_v47, %v315_v46  ;;  %v348_v56 = vpack.c.bf16 %v332_v52, %v331_v43  ;;  %1101 = vmatprep.subr.bf16.mxu0 %v1159_v58  ;;  %p1161_p0 = scmp.ne.s32.totalorder %s893_s13, %s1160_s14  ;;  %p1166_p2 = scmp.lt.s32.totalorder %s1160_s14, %s1160_s14 }
  0xfd   :  { %v339_v55 = vpack.c.bf16 %v314_v51, %v313_v50  ;;  %v347_v57 = vpack.c.bf16 %v330_v54, %v329_v48 }
  0xfe   :  { %p1167_p3 = por %p1166_p2, %p1165_p1 }
  0xff   :  { %1067 = vmatprep.mubr.bf16.mxu1 %v339_v55  ;;  %1102 = vmatpush3.bf16.msra.mxu0 %v1159_v58 }
 0x100   :  { %1068 = vmatmul.mubr.bf16.gmra.mrb[28].mxu1 %v340_v53  ;;  %p1168_p4 = pnand %p1167_p3, %p1161_p0 }
 0x101   :  { %1071 = vmatprep.mubr.bf16.mxu1 %v1399_v35 }
 0x108   :  { %1072 = vmatmul.mubr.bf16.gmra.mrb[32].mxu1 %v1396_v32  ;;  %v367_v32 = vsub.s32 1, %v1377_v1 }
 0x109   :  { %1075 = vmatprep.mubr.bf16.mxu1 %v343_v63 }
 0x10a   :  { %v1437_v35 = vrot.slane %v1383_v3, %v367_v32 }
 0x110   :  { %1076 = vmatmul.mubr.bf16.gmra.mrb[36].mxu1 %v1408_v60 }
 0x111   :  { %1079 = vmatprep.mubr.bf16.mxu1 %v345_v30 }
 0x118   :  { %1080 = vmatmul.mubr.bf16.gmra.mrb[40].mxu1 %v346_v27 }
 0x119   :  { %1083 = vmatprep.mubr.bf16.mxu1 %v347_v57 }
 0x120   :  { %1084 = vmatmul.mubr.bf16.gmra.mrb[44].mxu1 %v348_v56 }
 0x1bb   :  { %v1057_v59 = vpop.f32.mrb[16].mxu1 }
 0x1bc   :  { %v460_v60 = vadd.f32 %v1057_v59, %v1437_v35  ;;  %v451_v61 = vpop.f32.mrb[17].mxu1 }
 0x1bd   :  { %v452_v62 = vadd.f32 %v451_v61, %v1437_v35  ;;  %v1058_v63 = vpop.f32.mrb[18].mxu1 }
 0x1be   :  { %v463_v0 = vadd.f32 %v1058_v63, %v1437_v35  ;;  %v454_v2 = vpop.f32.mrb[19].mxu1  ;;  %v580_v6 = vmax.f32 %v460_v60, 0.0 }
 0x1bf   :  { %v455_v5 = vadd.f32 %v454_v2, %v1437_v35  ;;  %v578_v8 = vmax.f32 %v452_v62, 0.0 }
 0x1c0   :  { %v581_v7 = vmax.f32 %v463_v0, 0.0 }
 0x1c1   :  { %v579_v9 = vmax.f32 %v455_v5, 0.0 }
 0x1c2   :  { %v611_v10 = vpack.c.bf16 %v581_v7, %v580_v6 }
 0x1c3   :  { %v610_v11 = vpack.c.bf16 %v579_v9, %v578_v8  ;;  %v1061_v12 = vpop.f32.mrb[20].mxu1 }
 0x1c4   :  { %v476_v13 = vadd.f32 %v1061_v12, %v1437_v35  ;;  %v467_v14 = vpop.f32.mrb[21].mxu1 }
 0x1c5   :  { %v468_v15 = vadd.f32 %v467_v14, %v1437_v35  ;;  %v1062_v16 = vpop.f32.mrb[22].mxu1  ;;  %1103 = vmatprep.mubr.bf16.mxu0 %v610_v11 }
 0x1c6   :  { %v479_v17 = vadd.f32 %v1062_v16, %v1437_v35  ;;  %v470_v18 = vpop.f32.mrb[23].mxu1  ;;  %1104 = vmatmul.mubr.bf16.vlgmr.msra.gmra.mrb[16].mxu0 %v611_v10  ;;  %v584_v20 = vmax.f32 %v476_v13, 0.0 }
 0x1c7   :  { %v471_v19 = vadd.f32 %v470_v18, %v1437_v35  ;;  %v582_v22 = vmax.f32 %v468_v15, 0.0 }
 0x1c8   :  { %v585_v21 = vmax.f32 %v479_v17, 0.0 }
 0x1c9   :  { %v583_v23 = vmax.f32 %v471_v19, 0.0 }
 0x1ca   :  { %v613_v24 = vpack.c.bf16 %v585_v21, %v584_v20 }
 0x1cb   :  { %v612_v25 = vpack.c.bf16 %v583_v23, %v582_v22  ;;  %v1065_v26 = vpop.f32.mrb[24].mxu1 }
 0x1cc   :  { %v492_v27 = vadd.f32 %v1065_v26, %v1437_v35  ;;  %v483_v28 = vpop.f32.mrb[25].mxu1 }
 0x1cd   :  { %v484_v29 = vadd.f32 %v483_v28, %v1437_v35  ;;  %v1066_v30 = vpop.f32.mrb[26].mxu1  ;;  %1107 = vmatprep.mubr.bf16.mxu0 %v612_v25 }
 0x1ce   :  { %v495_v31 = vadd.f32 %v1066_v30, %v1437_v35  ;;  %v486_v33 = vpop.f32.mrb[27].mxu1  ;;  %1108 = vmatmul.mubr.bf16.gmra.mrb[20].mxu0 %v613_v24  ;;  %v588_v36 = vmax.f32 %v492_v27, 0.0 }
 0x1cf   :  { %v487_v34 = vadd.f32 %v486_v33, %v1437_v35  ;;  %v586_v38 = vmax.f32 %v484_v29, 0.0 }
 0x1d0   :  { %v589_v37 = vmax.f32 %v495_v31, 0.0 }
 0x1d1   :  { %v587_v39 = vmax.f32 %v487_v34, 0.0 }
 0x1d2   :  { %v615_v40 = vpack.c.bf16 %v589_v37, %v588_v36 }
 0x1d3   :  { %v614_v41 = vpack.c.bf16 %v587_v39, %v586_v38  ;;  %v1069_v42 = vpop.f32.mrb[28].mxu1 }
 0x1d4   :  { %v508_v43 = vadd.f32 %v1069_v42, %v1437_v35  ;;  %v499_v44 = vpop.f32.mrb[29].mxu1 }
 0x1d5   :  { %v500_v45 = vadd.f32 %v499_v44, %v1437_v35  ;;  %v1070_v46 = vpop.f32.mrb[30].mxu1  ;;  %1111 = vmatprep.mubr.bf16.mxu0 %v614_v41 }
 0x1d6   :  { %v511_v47 = vadd.f32 %v1070_v46, %v1437_v35  ;;  %v502_v48 = vpop.f32.mrb[31].mxu1  ;;  %1112 = vmatmul.mubr.bf16.gmra.mrb[24].mxu0 %v615_v40  ;;  %v592_v50 = vmax.f32 %v508_v43, 0.0 }
 0x1d7   :  { %v503_v49 = vadd.f32 %v502_v48, %v1437_v35  ;;  %v590_v52 = vmax.f32 %v500_v45, 0.0 }
 0x1d8   :  { %v593_v51 = vmax.f32 %v511_v47, 0.0 }
 0x1d9   :  { %v591_v53 = vmax.f32 %v503_v49, 0.0 }
 0x1da   :  { %v617_v54 = vpack.c.bf16 %v593_v51, %v592_v50  ;;  %v644_v51 = vsub.s32 2, %v1377_v1 }
 0x1db   :  { %v616_v55 = vpack.c.bf16 %v591_v53, %v590_v52  ;;  %v1073_v56 = vpop.f32.mrb[32].mxu1 }
 0x1dc   :  { %v524_v57 = vadd.f32 %v1073_v56, %v1437_v35  ;;  %v515_v4 = vpop.f32.mrb[33].mxu1  ;;  %v1473_v52 = vrot.slane %v1383_v3, %v644_v51 }
 0x1dd   :  { %v516_v58 = vadd.f32 %v515_v4, %v1437_v35  ;;  %v1074_v32 = vpop.f32.mrb[34].mxu1  ;;  %1115 = vmatprep.mubr.bf16.mxu0 %v616_v55 }
 0x1de   :  { %v527_v59 = vadd.f32 %v1074_v32, %v1437_v35  ;;  %v518_v60 = vpop.f32.mrb[35].mxu1  ;;  %1116 = vmatmul.mubr.bf16.gmra.mrb[28].mxu0 %v617_v54  ;;  %v596_v62 = vmax.f32 %v524_v57, 0.0 }
 0x1df   :  { %v519_v61 = vadd.f32 %v518_v60, %v1437_v35  ;;  %v594_v0 = vmax.f32 %v516_v58, 0.0 }
 0x1e0   :  { %v597_v63 = vmax.f32 %v527_v59, 0.0 }
 0x1e1   :  { %v595_v2 = vmax.f32 %v519_v61, 0.0 }
 0x1e2   :  { %v619_v5 = vpack.c.bf16 %v597_v63, %v596_v62 }
 0x1e3   :  { %v618_v6 = vpack.c.bf16 %v595_v2, %v594_v0  ;;  %v1077_v7 = vpop.f32.mrb[36].mxu1 }
 0x1e4   :  { %v540_v8 = vadd.f32 %v1077_v7, %v1437_v35  ;;  %v531_v9 = vpop.f32.mrb[37].mxu1 }
 0x1e5   :  { %v532_v10 = vadd.f32 %v531_v9, %v1437_v35  ;;  %v1078_v11 = vpop.f32.mrb[38].mxu1  ;;  %1119 = vmatprep.mubr.bf16.mxu0 %v618_v6 }
 0x1e6   :  { %v543_v12 = vadd.f32 %v1078_v11, %v1437_v35  ;;  %v534_v13 = vpop.f32.mrb[39].mxu1  ;;  %1120 = vmatmul.mubr.bf16.gmra.mrb[32].mxu0 %v619_v5  ;;  %v600_v15 = vmax.f32 %v540_v8, 0.0 }
 0x1e7   :  { %v535_v14 = vadd.f32 %v534_v13, %v1437_v35  ;;  %v598_v17 = vmax.f32 %v532_v10, 0.0 }
 0x1e8   :  { %v601_v16 = vmax.f32 %v543_v12, 0.0 }
 0x1e9   :  { %v599_v18 = vmax.f32 %v535_v14, 0.0 }
 0x1ea   :  { %v621_v19 = vpack.c.bf16 %v601_v16, %v600_v15 }
 0x1eb   :  { %v620_v20 = vpack.c.bf16 %v599_v18, %v598_v17  ;;  %v1081_v21 = vpop.f32.mrb[40].mxu1 }
 0x1ec   :  { %v556_v22 = vadd.f32 %v1081_v21, %v1437_v35  ;;  %v547_v23 = vpop.f32.mrb[41].mxu1 }
 0x1ed   :  { %v548_v24 = vadd.f32 %v547_v23, %v1437_v35  ;;  %v1082_v25 = vpop.f32.mrb[42].mxu1  ;;  %1123 = vmatprep.mubr.bf16.mxu0 %v620_v20 }
 0x1ee   :  { %v559_v26 = vadd.f32 %v1082_v25, %v1437_v35  ;;  %v550_v27 = vpop.f32.mrb[43].mxu1  ;;  %1124 = vmatmul.mubr.bf16.gmra.mrb[36].mxu0 %v621_v19  ;;  %v604_v29 = vmax.f32 %v556_v22, 0.0 }
 0x1ef   :  { %v551_v28 = vadd.f32 %v550_v27, %v1437_v35  ;;  %v602_v31 = vmax.f32 %v548_v24, 0.0 }
 0x1f0   :  { %v605_v30 = vmax.f32 %v559_v26, 0.0 }
 0x1f1   :  { %v603_v33 = vmax.f32 %v551_v28, 0.0 }
 0x1f2   :  { %v623_v34 = vpack.c.bf16 %v605_v30, %v604_v29 }
 0x1f3   :  { %v622_v36 = vpack.c.bf16 %v603_v33, %v602_v31  ;;  %v1085_v37 = vpop.f32.mrb[44].mxu1 }
 0x1f4   :  { %v572_v38 = vadd.f32 %v1085_v37, %v1437_v35  ;;  %v563_v39 = vpop.f32.mrb[45].mxu1 }
 0x1f5   :  { %v564_v40 = vadd.f32 %v563_v39, %v1437_v35  ;;  %v1086_v41 = vpop.f32.mrb[46].mxu1  ;;  %1127 = vmatprep.mubr.bf16.mxu0 %v622_v36 }
 0x1f6   :  { %v575_v42 = vadd.f32 %v1086_v41, %v1437_v35  ;;  %v566_v43 = vpop.f32.mrb[47].mxu1  ;;  %1128 = vmatmul.mubr.bf16.gmra.mrb[40].mxu0 %v623_v34  ;;  %v608_v45 = vmax.f32 %v572_v38, 0.0 }
 0x1f7   :  { %v567_v44 = vadd.f32 %v566_v43, %v1437_v35  ;;  %v606_v47 = vmax.f32 %v564_v40, 0.0 }
 0x1f8   :  { %v609_v46 = vmax.f32 %v575_v42, 0.0 }
 0x1f9   :  { %v607_v48 = vmax.f32 %v567_v44, 0.0 }
 0x1fa   :  { %v625_v49 = vpack.c.bf16 %v609_v46, %v608_v45 }
 0x1fb   :  { %v624_v50 = vpack.c.bf16 %v607_v48, %v606_v47 }
 0x1fd   :  { %1131 = vmatprep.mubr.bf16.mxu0 %v624_v50 }
 0x1fe   :  { %1132 = vmatmul.mubr.bf16.gmra.mrb[44].mxu0 %v625_v49 }
 0x299   :  { %v1105_v53 = vpop.f32.mrb[16].mxu0 }
 0x29a   :  { %v737_v54 = vadd.f32 %v1105_v53, %v1473_v52  ;;  %v728_v55 = vpop.f32.mrb[17].mxu0 }
 0x29b   :  { %v729_v56 = vadd.f32 %v728_v55, %v1473_v52  ;;  %v1106_v35 = vpop.f32.mrb[18].mxu0 }
 0x29c   :  { %857 = vst [vmem:[#allocation2 + $0x10] sm:$0xff] %v737_v54  ;;  %v740_v57 = vadd.f32 %v1106_v35, %v1473_v52  ;;  %v731_v4 = vpop.f32.mrb[19].mxu0 }
 0x29d   :  { %855 = vst [vmem:[#allocation2] sm:$0xff] %v729_v56  ;;  %v732_v58 = vadd.f32 %v731_v4, %v1473_v52 }
 0x29e   :  { %858 = vst [vmem:[#allocation2 + $0x18] sm:$0xff] %v740_v57 }
 0x29f   :  { %856 = vst [vmem:[#allocation2 + $0x8] sm:$0xff] %v732_v58 }
 0x2a1   :  { %v1109_v1 = vpop.f32.mrb[20].mxu0 }
 0x2a2   :  { %v753_v3 = vadd.f32 %v1109_v1, %v1473_v52  ;;  %v744_v32 = vpop.f32.mrb[21].mxu0 }
 0x2a3   :  { %v745_v59 = vadd.f32 %v744_v32, %v1473_v52  ;;  %v1110_v60 = vpop.f32.mrb[22].mxu0 }
 0x2a4   :  { %861 = vst [vmem:[#allocation2 + $0x30] sm:$0xff] %v753_v3  ;;  %v756_v61 = vadd.f32 %v1110_v60, %v1473_v52  ;;  %v747_v62 = vpop.f32.mrb[23].mxu0 }
 0x2a5   :  { %859 = vst [vmem:[#allocation2 + $0x20] sm:$0xff] %v745_v59  ;;  %v748_v63 = vadd.f32 %v747_v62, %v1473_v52 }
 0x2a6   :  { %862 = vst [vmem:[#allocation2 + $0x38] sm:$0xff] %v756_v61 }
 0x2a7   :  { %860 = vst [vmem:[#allocation2 + $0x28] sm:$0xff] %v748_v63 }
 0x2a9   :  { %v1113_v0 = vpop.f32.mrb[24].mxu0 }
 0x2aa   :  { %v769_v2 = vadd.f32 %v1113_v0, %v1473_v52  ;;  %v760_v5 = vpop.f32.mrb[25].mxu0 }
 0x2ab   :  { %v761_v6 = vadd.f32 %v760_v5, %v1473_v52  ;;  %v1114_v7 = vpop.f32.mrb[26].mxu0 }
 0x2ac   :  { %865 = vst [vmem:[#allocation2 + $0x50] sm:$0xff] %v769_v2  ;;  %v772_v8 = vadd.f32 %v1114_v7, %v1473_v52  ;;  %v763_v9 = vpop.f32.mrb[27].mxu0 }
 0x2ad   :  { %863 = vst [vmem:[#allocation2 + $0x40] sm:$0xff] %v761_v6  ;;  %v764_v10 = vadd.f32 %v763_v9, %v1473_v52 }
 0x2ae   :  { %866 = vst [vmem:[#allocation2 + $0x58] sm:$0xff] %v772_v8 }
 0x2af   :  { %864 = vst [vmem:[#allocation2 + $0x48] sm:$0xff] %v764_v10 }
 0x2b1   :  { %v1117_v11 = vpop.f32.mrb[28].mxu0 }
 0x2b2   :  { %v785_v12 = vadd.f32 %v1117_v11, %v1473_v52  ;;  %v776_v13 = vpop.f32.mrb[29].mxu0 }
 0x2b3   :  { %v777_v14 = vadd.f32 %v776_v13, %v1473_v52  ;;  %v1118_v15 = vpop.f32.mrb[30].mxu0 }
 0x2b4   :  { %869 = vst [vmem:[#allocation2 + $0x70] sm:$0xff] %v785_v12  ;;  %v788_v16 = vadd.f32 %v1118_v15, %v1473_v52  ;;  %v779_v17 = vpop.f32.mrb[31].mxu0 }
 0x2b5   :  { %867 = vst [vmem:[#allocation2 + $0x60] sm:$0xff] %v777_v14  ;;  %v780_v18 = vadd.f32 %v779_v17, %v1473_v52 }
 0x2b6   :  { %870 = vst [vmem:[#allocation2 + $0x78] sm:$0xff] %v788_v16 }
 0x2b7   :  { %868 = vst [vmem:[#allocation2 + $0x68] sm:$0xff] %v780_v18 }
 0x2b9   :  { %v1121_v19 = vpop.f32.mrb[32].mxu0 }
 0x2ba   :  { %v801_v20 = vadd.f32 %v1121_v19, %v1473_v52  ;;  %v792_v21 = vpop.f32.mrb[33].mxu0 }
 0x2bb   :  { %v793_v22 = vadd.f32 %v792_v21, %v1473_v52  ;;  %v1122_v23 = vpop.f32.mrb[34].mxu0 }
 0x2bc   :  { %873 = vst [vmem:[#allocation2 + $0x90] sm:$0xff] %v801_v20  ;;  %v804_v24 = vadd.f32 %v1122_v23, %v1473_v52  ;;  %v795_v25 = vpop.f32.mrb[35].mxu0 }
 0x2bd   :  { %871 = vst [vmem:[#allocation2 + $0x80] sm:$0xff] %v793_v22  ;;  %v796_v26 = vadd.f32 %v795_v25, %v1473_v52 }
 0x2be   :  { %874 = vst [vmem:[#allocation2 + $0x98] sm:$0xff] %v804_v24 }
 0x2bf   :  { %872 = vst [vmem:[#allocation2 + $0x88] sm:$0xff] %v796_v26 }
 0x2c1   :  { %v1125_v27 = vpop.f32.mrb[36].mxu0 }
 0x2c2   :  { %v817_v28 = vadd.f32 %v1125_v27, %v1473_v52  ;;  %v808_v29 = vpop.f32.mrb[37].mxu0 }
 0x2c3   :  { %v809_v30 = vadd.f32 %v808_v29, %v1473_v52  ;;  %v1126_v31 = vpop.f32.mrb[38].mxu0 }
 0x2c4   :  { %877 = vst [vmem:[#allocation2 + $0xb0] sm:$0xff] %v817_v28  ;;  %v820_v33 = vadd.f32 %v1126_v31, %v1473_v52  ;;  %v811_v34 = vpop.f32.mrb[39].mxu0 }
 0x2c5   :  { %875 = vst [vmem:[#allocation2 + $0xa0] sm:$0xff] %v809_v30  ;;  %v812_v36 = vadd.f32 %v811_v34, %v1473_v52 }
 0x2c6   :  { %878 = vst [vmem:[#allocation2 + $0xb8] sm:$0xff] %v820_v33 }
 0x2c7   :  { %876 = vst [vmem:[#allocation2 + $0xa8] sm:$0xff] %v812_v36 }
 0x2c9   :  { %v1129_v37 = vpop.f32.mrb[40].mxu0 }
 0x2ca   :  { %v833_v38 = vadd.f32 %v1129_v37, %v1473_v52  ;;  %v824_v39 = vpop.f32.mrb[41].mxu0 }
 0x2cb   :  { %v825_v40 = vadd.f32 %v824_v39, %v1473_v52  ;;  %v1130_v41 = vpop.f32.mrb[42].mxu0 }
 0x2cc   :  { %881 = vst [vmem:[#allocation2 + $0xd0] sm:$0xff] %v833_v38  ;;  %v836_v42 = vadd.f32 %v1130_v41, %v1473_v52  ;;  %v827_v43 = vpop.f32.mrb[43].mxu0 }
 0x2cd   :  { %879 = vst [vmem:[#allocation2 + $0xc0] sm:$0xff] %v825_v40  ;;  %v828_v44 = vadd.f32 %v827_v43, %v1473_v52 }
 0x2ce   :  { %882 = vst [vmem:[#allocation2 + $0xd8] sm:$0xff] %v836_v42 }
 0x2cf   :  { %880 = vst [vmem:[#allocation2 + $0xc8] sm:$0xff] %v828_v44 }
 0x2d1   :  { %v1133_v45 = vpop.f32.mrb[44].mxu0 }
 0x2d2   :  { %v849_v46 = vadd.f32 %v1133_v45, %v1473_v52  ;;  %v840_v47 = vpop.f32.mrb[45].mxu0 }
 0x2d3   :  { %v841_v48 = vadd.f32 %v840_v47, %v1473_v52  ;;  %v1134_v49 = vpop.f32.mrb[46].mxu0 }
 0x2d4   :  { %885 = vst [vmem:[#allocation2 + $0xf0] sm:$0xff] %v849_v46  ;;  %v852_v50 = vadd.f32 %v1134_v49, %v1473_v52  ;;  %v843_v51 = vpop.f32.mrb[47].mxu0 }
 0x2d5   :  { %883 = vst [vmem:[#allocation2 + $0xe0] sm:$0xff] %v841_v48  ;;  %v844_v53 = vadd.f32 %v843_v51, %v1473_v52 }
 0x2d6   :  { %886 = vst [vmem:[#allocation2 + $0xf8] sm:$0xff] %v852_v50 }
 0x2d7   :  { %884 = vst [vmem:[#allocation2 + $0xe8] sm:$0xff] %v844_v53 }
 0x2d8   :  { %1171 = shalt.err (!%p1168_p4)
}
 0x2d9   :  { %s1172_s17 = scalar_lea.hbm %s1524_s5, 4096 }
 0x2da   :  { %p1173_p5 = scmp.ne.s32.totalorder %s1524_s5, %s1172_s17  ;;  %p1176_p6 = scmp.lt.u32.totalorder %s1172_s17, %s1524_s5 }
 0x2dc   :  { %p1178_p7 = pnand %p1176_p6, %p1173_p5 }
 0x2de   :  { %1181 = shalt.err (!%p1178_p7)
}
 0x2df   :  { %s1185_s0 = smov 128   ;;  %s1186_s22 = smov 8  }
 0x2e0   :  { %898 = dma.vmem_to_hbm [thread:$0]  %s893_s13, 4096, %s1524_s5, [#allocation3], %s1185_s0, %s1185_s0, %s1186_s22  }
 0x2e1   :  { %1182 = dma.done.wait [#allocation3], 4096  }
 0x2e2   :  { %1183 = vsyncadd [#allocation3], 4294963200 }
 0x2e3   :  { %902 = vsyncpa [#allocation3], 1 }

</bundles_post_ra>
